<compile_context>
chip_gen: v7x
topology: tpu7x:2x2x1
jax: 0.10.0
libtpu: 0.0.40
codegen_flags: <defaults>
</compile_context>

<pallas_src>
import functools

import jax
import jax.numpy as jnp
from jax.experimental import pallas as pl
from jax.experimental.pallas import tpu as pltpu


def _round_up(x, m):
    return ((x + m - 1) // m) * m


def _cdiv(a, b):
    return -(-a // b)


def _pad2d(a, rows, cols):
    pr, pc = rows - a.shape[0], cols - a.shape[1]
    if pr or pc:
        a = jnp.pad(a, ((0, pr), (0, pc)))
    return a


def _two_core_chip():
    """True on chips whose TensorCores split 'parallel' grid axes (v7x/v5p/v4)."""
    try:
        kind = jax.devices()[0].device_kind.lower()
    except Exception:  # pragma: no cover - defensive
        return False
    return any(tag in kind for tag in ("v7", "v5p", "v4"))


# -----------------------------------------------------------------------------
# Kernel: layer-1 K-streamed into an f32 VMEM accumulator, layers 2/3 + sigmoid
# run once per batch tile in the last-K epilogue.
# -----------------------------------------------------------------------------
def _mlp_kernel(x_ref, w1_ref, b1_ref, w2_ref, b2_ref, w3_ref, b3_ref,
                o_ref, acc_ref):
    k = pl.program_id(1)

    @pl.when(k == 0)
    def _():
        # Seed the accumulator with the layer-1 bias (removes the epilogue add).
        acc_ref[...] = jnp.broadcast_to(b1_ref[...], acc_ref.shape)

    # Layer-1 partial product: x tile (bf16) @ W1 K-tile (bf16), f32 accumulate.
    acc_ref[...] += jnp.dot(x_ref[...], w1_ref[...],
                            preferred_element_type=jnp.float32)

    @pl.when(k == pl.num_programs(1) - 1)
    def _():
        # Layer-1 epilogue: ReLU (Dropout -> identity in eval mode).
        h1 = jnp.maximum(acc_ref[...], 0.0)
        # Layer 2: Linear(512, 256) + ReLU (Dropout -> identity in eval mode).
        h2 = jnp.dot(h1.astype(jnp.bfloat16), w2_ref[...],
                     preferred_element_type=jnp.float32)
        h2 = jnp.maximum(h2 + b2_ref[...], 0.0)
        # Layer 3: Linear(256, stim) + exact Sigmoid.
        z = jnp.dot(h2.astype(jnp.bfloat16), w3_ref[...],
                    preferred_element_type=jnp.float32) + b3_ref[...]
        o_ref[...] = 1.0 / (1.0 + jnp.exp(-z))


# -----------------------------------------------------------------------------
# One-time parameter preprocessing (hoisted out of the per-call forward path).
# -----------------------------------------------------------------------------
def prepare_params(params, *, max_k_tile=4096):
    """Pad + cast the weights once.

    params: (w1 (fmri,512), b1 (1,512), w2 (512,256), b2 (1,256),
             w3 (256,stim), b3 (1,stim)), float weights.
    Returns a dict with bf16 padded weight matrices, f32 padded biases,
    the designed layer-1 k_tile, and the logical dims.
    """
    w1, b1, w2, b2, w3, b3 = params
    fmri_dim, h1_dim = w1.shape
    h2_dim, stim_dim = w2.shape[1], w3.shape[1]

    # Balanced K tiling for layer 1: multiple of 128, at most max_k_tile.
    k128 = _round_up(fmri_dim, 128)
    n_k = max(1, _cdiv(k128, max(128, max_k_tile)))
    k_tile = _round_up(_cdiv(k128, n_k), 128)
    k_p = n_k * k_tile

    h1_p = _round_up(h1_dim, 128)
    h2_p = _round_up(h2_dim, 128)
    stim_p = _round_up(stim_dim, 128)

    weights = (
        _pad2d(w1, k_p, h1_p).astype(jnp.bfloat16),
        _pad2d(b1.reshape(1, -1), 1, h1_p).astype(jnp.float32),
        _pad2d(w2, h1_p, h2_p).astype(jnp.bfloat16),
        _pad2d(b2.reshape(1, -1), 1, h2_p).astype(jnp.float32),
        _pad2d(w3, h2_p, stim_p).astype(jnp.bfloat16),
        _pad2d(b3.reshape(1, -1), 1, stim_p).astype(jnp.float32),
    )
    return {
        "weights": weights,
        "k_tile": k_tile,
        "fmri_dim": fmri_dim,
        "stimulus_dim": stim_dim,
    }


# -----------------------------------------------------------------------------
# Forward (eval mode). padded_weights comes from prepare_params()["weights"].
# -----------------------------------------------------------------------------
def brain_decoder_forward(fmri, padded_weights, *, stimulus_dim,
                          k_tile=None, batch_tile=None):
    """fmri: (B, fmri_dim) float -> (B, stimulus_dim) f32."""
    w1_p, b1_p, w2_p, b2_p, w3_p, b3_p = padded_weights
    B, fmri_dim = fmri.shape
    k_p, h1_p = w1_p.shape
    h2_p, stim_p = w2_p.shape[1], w3_p.shape[1]
    assert fmri_dim <= k_p, "fmri feature dim larger than prepared W1"

    # ---- K tile for the streamed layer-1 contraction ----
    if k_tile is None:
        k_tile = k_p if k_p <= 4096 else 4096
    assert k_p % k_tile == 0, "k_tile must divide the padded fmri dim"

    # ---- batch tile: fill the MXU M dim; >=2 parallel tiles on 2-TC chips ---
    if batch_tile is None:
        batch_tile = min(512, _round_up(B, 16))
        if _two_core_chip() and B >= 32:
            batch_tile = min(batch_tile, _round_up(_cdiv(B, 2), 16))
    batch_tile = max(16, _round_up(batch_tile, 16))

    B_p = _round_up(B, batch_tile)
    n_bt = B_p // batch_tile

    # Activations streamed in bf16 (halves HBM bytes; no in-kernel cast).
    x_p = _pad2d(fmri.astype(jnp.bfloat16), B_p, k_p)

    grid = (n_bt, k_p // k_tile)   # (batch [parallel], reduction-last)

    in_specs = [
        pl.BlockSpec((batch_tile, k_tile), lambda i, k: (i, k)),   # x tile
        pl.BlockSpec((k_tile, h1_p),       lambda i, k: (k, 0)),   # W1 K-tile
        pl.BlockSpec((1, h1_p),            lambda i, k: (0, 0)),   # b1
        pl.BlockSpec((h1_p, h2_p),         lambda i, k: (0, 0)),   # W2
        pl.BlockSpec((1, h2_p),            lambda i, k: (0, 0)),   # b2
        pl.BlockSpec((h2_p, stim_p),       lambda i, k: (0, 0)),   # W3
        pl.BlockSpec((1, stim_p),          lambda i, k: (0, 0)),   # b3
    ]
    out_specs = pl.BlockSpec((batch_tile, stim_p), lambda i, k: (i, 0))

    # ---- tight VMEM budget (streamed blocks double-buffered, bf16 bytes) ----
    vmem_bytes = (
        2 * batch_tile * k_tile * 2                       # x tile (bf16) x2
        + 2 * k_tile * h1_p * 2                           # W1 K-tile (bf16) x2
        + 2 * (h1_p * h2_p + h2_p * stim_p) * 2           # W2, W3 (bf16) x2
        + 2 * 8 * (h1_p + h2_p + stim_p) * 4              # biases (8-sublane pad)
        + batch_tile * h1_p * 4                           # f32 accumulator
        + 2 * batch_tile * stim_p * 4                     # out tile (f32) x2
    )
    vmem_limit = int(min(2 * vmem_bytes + (4 << 20), 48 << 20))

    cost = pl.CostEstimate(
        flops=2 * B_p * (k_p * h1_p + h1_p * h2_p + h2_p * stim_p),
        transcendentals=B_p * stim_p,
        bytes_accessed=int(
            x_p.size * 2                                   # x streamed once (bf16)
            + w1_p.size * 2 * n_bt                         # W1 re-streamed per batch tile
            + (w2_p.size + w3_p.size) * 2                  # fetched once (constant idx)
            + (b1_p.size + b2_p.size + b3_p.size) * 4
            + B_p * stim_p * 4),
    )

    out = pl.pallas_call(
        _mlp_kernel,
        out_shape=jax.ShapeDtypeStruct((B_p, stim_p), jnp.float32),
        grid_spec=pltpu.PrefetchScalarGridSpec(
            num_scalar_prefetch=0,
            grid=grid,
            in_specs=in_specs,
            out_specs=out_specs,
            scratch_shapes=[pltpu.VMEM((batch_tile, h1_p), jnp.float32)],
        ),
        compiler_params=pltpu.CompilerParams(
            dimension_semantics=("parallel", "arbitrary"),
            vmem_limit_bytes=vmem_limit,
        ),
        cost_estimate=cost,
    )(x_p, w1_p, b1_p, w2_p, b2_p, w3_p, b3_p)

    return out[:B, :stimulus_dim]


# -----------------------------------------------------------------------------
# Init + pure-JAX reference (matching numerics: bf16 dots, f32 accumulate).
# -----------------------------------------------------------------------------
def init_params(key, fmri_dim, stimulus_dim):
    """PyTorch-style (Kaiming-uniform-ish) init in f32; weights pre-transposed
    to (in_features, out_features) so the kernel computes x @ W + b."""
    dims = [(fmri_dim, 512), (512, 256), (256, stimulus_dim)]
    params = []
    for din, dout in dims:
        key, kw, kb = jax.random.split(key, 3)
        bound = float(din) ** -0.5
        w = jax.random.uniform(kw, (din, dout), jnp.float32, -bound, bound)
        b = jax.random.uniform(kb, (1, dout), jnp.float32, -bound, bound)
        params += [w, b]
    return tuple(params)


def reference_forward(fmri, params):
    w1, b1, w2, b2, w3, b3 = params
    x = fmri.astype(jnp.bfloat16)
    h1 = jnp.maximum(
        jnp.dot(x, w1.astype(jnp.bfloat16),
                preferred_element_type=jnp.float32) + b1, 0.0)
    h2 = jnp.maximum(
        jnp.dot(h1.astype(jnp.bfloat16), w2.astype(jnp.bfloat16),
                preferred_element_type=jnp.float32) + b2, 0.0)
    z = jnp.dot(h2.astype(jnp.bfloat16), w3.astype(jnp.bfloat16),
                preferred_element_type=jnp.float32) + b3
    return jax.nn.sigmoid(z)


if __name__ == "__main__":
    key = jax.random.PRNGKey(0)
    k_x, k_w = jax.random.split(key)

    batch = 24            # deliberately ragged: padded to 32 internally
    fmri_dim = 384        # -> 3 K-tiles of 128 (max_k_tile=128 below)
    stimulus_dim = 96     # padded to 128 lanes internally, then sliced back

    fmri = jax.random.normal(k_x, (batch, fmri_dim), jnp.float32)
    params = init_params(k_w, fmri_dim, stimulus_dim)

    # Weight padding / bf16 casting is done ONCE, outside the forward path.
    prepped = prepare_params(params, max_k_tile=128)

    run = jax.jit(functools.partial(
        brain_decoder_forward,
        stimulus_dim=prepped["stimulus_dim"],
        k_tile=prepped["k_tile"],
        batch_tile=16))           # small tile -> exercises a 2 x 3 grid
    out = jax.block_until_ready(run(fmri, prepped["weights"]))

    ref = reference_forward(fmri, params)
    assert out.shape == (batch, stimulus_dim)
    err = float(jnp.max(jnp.abs(out - ref)))
    assert err < 5e-3, f"mismatch vs JAX reference: max abs err {err}"

    print("KERNEL_OK")
</pallas_src>

<mosaic_0001>
module attributes {stable_mosaic.version = 11 : i64} {
  func.func @_mlp_kernel(%arg0: i32, %arg1: i32, %arg2: memref<16x128xbf16, #tpu.memory_space<vmem>>, %arg3: memref<128x512xbf16, #tpu.memory_space<vmem>>, %arg4: memref<1x512xf32, #tpu.memory_space<vmem>>, %arg5: memref<512x256xbf16, #tpu.memory_space<vmem>>, %arg6: memref<1x256xf32, #tpu.memory_space<vmem>>, %arg7: memref<256x128xbf16, #tpu.memory_space<vmem>>, %arg8: memref<1x128xf32, #tpu.memory_space<vmem>>, %arg9: memref<16x128xf32, #tpu.memory_space<vmem>>, %arg10: memref<16x512xf32, #tpu.memory_space<vmem>>) attributes {dimension_semantics = [#tpu.dimension_semantics<parallel>, #tpu.dimension_semantics<arbitrary>], iteration_bounds = array<i64: 2, 3>, scalar_prefetch = 0 : i64, scratch_operands = 1 : i64, tpu.core_type = #tpu.core_type<tc>, window_params = [{transform_indices = @transform_0, window_bounds = array<i64: 16, 128>}, {transform_indices = @transform_1, window_bounds = array<i64: 128, 512>}, {pipeline_mode = #tpu.pipeline_mode<synchronous>, transform_indices = @transform_2, window_bounds = array<i64: 1, 512>}, {pipeline_mode = #tpu.pipeline_mode<synchronous>, transform_indices = @transform_3, window_bounds = array<i64: 512, 256>}, {pipeline_mode = #tpu.pipeline_mode<synchronous>, transform_indices = @transform_4, window_bounds = array<i64: 1, 256>}, {pipeline_mode = #tpu.pipeline_mode<synchronous>, transform_indices = @transform_5, window_bounds = array<i64: 256, 128>}, {pipeline_mode = #tpu.pipeline_mode<synchronous>, transform_indices = @transform_6, window_bounds = array<i64: 1, 128>}, {transform_indices = @transform_7, window_bounds = array<i64: 16, 128>}]} {
    %c0_i32 = arith.constant 0 : i32
    %0 = arith.cmpi eq, %arg1, %c0_i32 : i32
    %1 = arith.extui %0 : i1 to i32
    %c0_i32_0 = arith.constant 0 : i32
    %2 = arith.cmpi ne, %1, %c0_i32_0 : i32
    scf.if %2 {
      %c0_9 = arith.constant 0 : index
      %c0_10 = arith.constant 0 : index
      %12 = vector.load %arg4[%c0_9, %c0_10] : memref<1x512xf32, #tpu.memory_space<vmem>>, vector<1x512xf32>
      %13 = vector.shape_cast %12 : vector<1x512xf32> to vector<1x512xf32>
      %14 = vector.broadcast %13 : vector<1x512xf32> to vector<16x512xf32>
      %c0_11 = arith.constant 0 : index
      %c0_12 = arith.constant 0 : index
      %15 = vector.load %arg10[%c0_11, %c0_12] : memref<16x512xf32, #tpu.memory_space<vmem>>, vector<16x512xf32>
      tpu.vector_store %arg10[%c0_11, %c0_12], %14 {strides = array<i32>} : memref<16x512xf32, #tpu.memory_space<vmem>>, vector<16x512xf32>,
    } else {
    }
    %c0 = arith.constant 0 : index
    %c0_1 = arith.constant 0 : index
    %3 = vector.load %arg10[%c0, %c0_1] : memref<16x512xf32, #tpu.memory_space<vmem>>, vector<16x512xf32>
    %c0_2 = arith.constant 0 : index
    %c0_3 = arith.constant 0 : index
    %4 = vector.load %arg2[%c0_2, %c0_3] : memref<16x128xbf16, #tpu.memory_space<vmem>>, vector<16x128xbf16>
    %c0_4 = arith.constant 0 : index
    %c0_5 = arith.constant 0 : index
    %5 = vector.load %arg3[%c0_4, %c0_5] : memref<128x512xbf16, #tpu.memory_space<vmem>>, vector<128x512xbf16>
    %cst = arith.constant dense<0.000000e+00> : vector<16x512xf32>
    %6 = tpu.matmul %4, %5, %cst {dimension_numbers = #tpu.dot_dimension_numbers<[1], [0], [0], [1], [0, 0, 1, 1], [], []>} : vector<16x128xbf16>, vector<128x512xbf16>, vector<16x512xf32> -> vector<16x512xf32>
    %7 = arith.addf %3, %6 : vector<16x512xf32>
    %c0_6 = arith.constant 0 : index
    %c0_7 = arith.constant 0 : index
    %8 = vector.load %arg10[%c0_6, %c0_7] : memref<16x512xf32, #tpu.memory_space<vmem>>, vector<16x512xf32>
    tpu.vector_store %arg10[%c0_6, %c0_7], %7 {strides = array<i32>} : memref<16x512xf32, #tpu.memory_space<vmem>>, vector<16x512xf32>,
    %c2_i32 = arith.constant 2 : i32
    %9 = arith.cmpi eq, %arg1, %c2_i32 : i32
    %10 = arith.extui %9 : i1 to i32
    %c0_i32_8 = arith.constant 0 : i32
    %11 = arith.cmpi ne, %10, %c0_i32_8 : i32
    scf.if %11 {
      %c0_9 = arith.constant 0 : index
      %c0_10 = arith.constant 0 : index
      %12 = vector.load %arg10[%c0_9, %c0_10] : memref<16x512xf32, #tpu.memory_space<vmem>>, vector<16x512xf32>
      %cst_11 = arith.constant 0.000000e+00 : f32
      %13 = vector.broadcast %cst_11 : f32 to vector<16x512xf32>
      %14 = arith.maximumf %12, %13 : vector<16x512xf32>
      %15 = arith.truncf %14 : vector<16x512xf32> to vector<16x512xbf16>
      %c0_12 = arith.constant 0 : index
      %c0_13 = arith.constant 0 : index
      %16 = vector.load %arg5[%c0_12, %c0_13] : memref<512x256xbf16, #tpu.memory_space<vmem>>, vector<512x256xbf16>
      %cst_14 = arith.constant dense<0.000000e+00> : vector<16x256xf32>
      %17 = tpu.matmul %15, %16, %cst_14 {dimension_numbers = #tpu.dot_dimension_numbers<[1], [0], [0], [1], [0, 0, 1, 1], [], []>} : vector<16x512xbf16>, vector<512x256xbf16>, vector<16x256xf32> -> vector<16x256xf32>
      %c0_15 = arith.constant 0 : index
      %c0_16 = arith.constant 0 : index
      %18 = vector.load %arg6[%c0_15, %c0_16] : memref<1x256xf32, #tpu.memory_space<vmem>>, vector<1x256xf32>
      %19 = vector.broadcast %18 : vector<1x256xf32> to vector<16x256xf32>
      %20 = arith.addf %17, %19 : vector<16x256xf32>
      %cst_17 = arith.constant 0.000000e+00 : f32
      %21 = vector.broadcast %cst_17 : f32 to vector<16x256xf32>
      %22 = arith.maximumf %20, %21 : vector<16x256xf32>
      %23 = arith.truncf %22 : vector<16x256xf32> to vector<16x256xbf16>
      %c0_18 = arith.constant 0 : index
      %c0_19 = arith.constant 0 : index
      %24 = vector.load %arg7[%c0_18, %c0_19] : memref<256x128xbf16, #tpu.memory_space<vmem>>, vector<256x128xbf16>
      %cst_20 = arith.constant dense<0.000000e+00> : vector<16x128xf32>
      %25 = tpu.matmul %23, %24, %cst_20 {dimension_numbers = #tpu.dot_dimension_numbers<[1], [0], [0], [1], [0, 0, 1, 1], [], []>} : vector<16x256xbf16>, vector<256x128xbf16>, vector<16x128xf32> -> vector<16x128xf32>
      %c0_21 = arith.constant 0 : index
      %c0_22 = arith.constant 0 : index
      %26 = vector.load %arg8[%c0_21, %c0_22] : memref<1x128xf32, #tpu.memory_space<vmem>>, vector<1x128xf32>
      %27 = vector.broadcast %26 : vector<1x128xf32> to vector<16x128xf32>
      %28 = arith.addf %25, %27 : vector<16x128xf32>
      %cst_23 = arith.constant 0.000000e+00 : f32
      %29 = vector.broadcast %cst_23 : f32 to vector<16x128xf32>
      %30 = arith.subf %29, %28 : vector<16x128xf32>
      %31 = math.exp %30 : vector<16x128xf32>
      %cst_24 = arith.constant 1.000000e+00 : f32
      %32 = vector.broadcast %cst_24 : f32 to vector<16x128xf32>
      %33 = arith.addf %32, %31 : vector<16x128xf32>
      %cst_25 = arith.constant 1.000000e+00 : f32
      %34 = vector.broadcast %cst_25 : f32 to vector<16x128xf32>
      %35 = arith.divf %34, %33 : vector<16x128xf32>
      %c0_26 = arith.constant 0 : index
      %c0_27 = arith.constant 0 : index
      %36 = vector.load %arg9[%c0_26, %c0_27] : memref<16x128xf32, #tpu.memory_space<vmem>>, vector<16x128xf32>
      tpu.vector_store %arg9[%c0_26, %c0_27], %35 {strides = array<i32>} : memref<16x128xf32, #tpu.memory_space<vmem>>, vector<16x128xf32>,
    } else {
    }
    return
  }
  func.func @transform_0(%arg0: i32, %arg1: i32) -> (i32, i32) {
    %c0_i32 = arith.constant 0 : i32
    return %arg0, %arg1 : i32, i32
  }
  func.func @transform_1(%arg0: i32, %arg1: i32) -> (i32, i32) {
    %c0_i32 = arith.constant 0 : i32
    %c0_i32_0 = arith.constant 0 : i32
    return %arg1, %c0_i32 : i32, i32
  }
  func.func @transform_2(%arg0: i32, %arg1: i32) -> (i32, i32) {
    %c0_i32 = arith.constant 0 : i32
    %c0_i32_0 = arith.constant 0 : i32
    %c0_i32_1 = arith.constant 0 : i32
    return %c0_i32, %c0_i32_0 : i32, i32
  }
  func.func @transform_3(%arg0: i32, %arg1: i32) -> (i32, i32) {
    %c0_i32 = arith.constant 0 : i32
    %c0_i32_0 = arith.constant 0 : i32
    %c0_i32_1 = arith.constant 0 : i32
    return %c0_i32, %c0_i32_0 : i32, i32
  }
  func.func @transform_4(%arg0: i32, %arg1: i32) -> (i32, i32) {
    %c0_i32 = arith.constant 0 : i32
    %c0_i32_0 = arith.constant 0 : i32
    %c0_i32_1 = arith.constant 0 : i32
    return %c0_i32, %c0_i32_0 : i32, i32
  }
  func.func @transform_5(%arg0: i32, %arg1: i32) -> (i32, i32) {
    %c0_i32 = arith.constant 0 : i32
    %c0_i32_0 = arith.constant 0 : i32
    %c0_i32_1 = arith.constant 0 : i32
    return %c0_i32, %c0_i32_0 : i32, i32
  }
  func.func @transform_6(%arg0: i32, %arg1: i32) -> (i32, i32) {
    %c0_i32 = arith.constant 0 : i32
    %c0_i32_0 = arith.constant 0 : i32
    %c0_i32_1 = arith.constant 0 : i32
    return %c0_i32, %c0_i32_0 : i32, i32
  }
  func.func @transform_7(%arg0: i32, %arg1: i32) -> (i32, i32) {
    %c0_i32 = arith.constant 0 : i32
    %c0_i32_0 = arith.constant 0 : i32
    return %arg0, %c0_i32 : i32, i32
  }
}

</mosaic_0001>

<bundles_post_ra>
// kernel: brain_decoder_forward.1
= control target key start
LH: loop header
LB: loop body
LE: loop exit
PB: predicated region body
PF: predicated region fallthrough
CT: control target
= control target key end

     0   :  { %s2499_s0 = inlined_call_operand.vmem [shape: bf16[32,384], index: 0, kind: input, shape index: {}]   ;;  %s2500_s1 = inlined_call_operand.hbm [shape: bf16[384,512], index: 1, kind: input, shape index: {}]   ;;  %s2501_s2 = inlined_call_operand.vmem [shape: f32[1,512], index: 2, kind: input, shape index: {}]   ;;  %s2502_s3 = inlined_call_operand.hbm [shape: bf16[512,256], index: 3, kind: input, shape index: {}]   ;;  %s2503_s4 = inlined_call_operand.vmem [shape: f32[1,256], index: 4, kind: input, shape index: {}]   ;;  %s2504_s5 = inlined_call_operand.vmem [shape: bf16[256,128], index: 5, kind: input, shape index: {}]   ;;  %s2505_s6 = inlined_call_operand.vmem [shape: f32[1,128], index: 6, kind: input, shape index: {}]   ;;  %s2506_s7 = inlined_call_operand.vmem [shape: f32[32,128], index: 7, kind: output, shape index: {}]  }
   0x1   :  { %2515 = sst [smem:[#allocation14_spill]] %s2501_s2 }
   0x2   :  { %2516 = sst [smem:[#allocation15_spill]] %s2503_s4 }
   0x3   :  { %2517 = sst [smem:[#allocation16_spill]] %s2504_s5 }
   0x4   :  { %2518 = sst [smem:[#allocation17_spill]] %s2505_s6 }
   0x5   :  { %12 = vsyncpa [#allocation5], 0 }
   0x6   :  { %14 = vsyncpa [#allocation5 + $0x1], 0 }
   0x7   :  { %15 = vsyncpa [#allocation7], 0  ;;  %s2184_s24 = smov 0   ;;  %s2186_s25 = smov 0  }
   0x8   :  { %s2188_s26 = smov 0   ;;  %s2190_s27 = smov 0  }
   0x9   :  { %s2192_s28 = smov 0   ;;  %s2194_s29 = smov 0  }
   0xa   :  { %s2196_s30 = smov 0   ;;  %s2198_s8 = smov 0  }
   0xb   :  { %s2200_s9 = smov 0   ;;  %s2202_s10 = smov 0  }
   0xc LB: > { %s1556_s11 = sadd.s32 4294967295, %s2135_s10   ;;  %s30_s12 = sadd.s32 1, %s2127_s8  ;;  %s2135_s10 = sphi %s2202_s10, %s21_s10   ;;  %s2131_s9 = sphi %s2200_s9, %s2550_s9   ;;  %s2127_s8 = sphi %s2198_s8, %s2549_s8   ;;  %s2123_s30 = sphi %s2196_s30, %s2548_s30   ;;  %s2119_s29 = sphi %s2194_s29, %s2547_s29   ;;  %s2115_s28 = sphi %s2192_s28, %s2546_s28   ;;  %s2111_s27 = sphi %s2190_s27, %s2545_s27   ;;  %s2107_s26 = sphi %s2188_s26, %s2544_s26   ;;  %s2103_s25 = sphi %s2186_s25, %s2543_s25   ;;  %s2099_s24 = sphi %s2184_s24, %s2542_s24  }
   0xd   : > { %p31_p0 = scmp.ge.s32.totalorder %s30_s12, 3  ;;  %s33_s13 = sadd.s32 1, %s2131_s9 }
   0xe   : > { %s42_s14 = sadd.s32 1, %s2115_s28  ;;  %p49_p1 = scmp.ne.s32.totalorder %s2115_s28, %s2111_s27 }
   0xf   : > { %s2552_s12 = smov (%p31_p0, %s30_s12), 0  ;;  %s2554_s13 = smov (!%p31_p0, %s33_s13), %s2131_s9 }
  0x10   : > { %2519 = sst [smem:[#allocation10_spill]] %s2552_s12  ;;  %s38_s15 = ssub.s32 %s2127_s8, %s2552_s12 }
  0x11   : > { %p50_p2 = scmp.eq.s32.totalorder %s2135_s10, 0  ;;  %p35_p3 = scmp.ge.s32.totalorder %s2554_s13, 2 }
  0x12   : > { %p66_p4 = scmp.eq.s32.totalorder %s38_s15, 0  ;;  %s68_s17 = sadd.s32 1, %s2107_s26 }
  0x13   : > { %p2246_p5 = por %p50_p2, %p49_p1  ;;  %s2556_s13 = smov (%p35_p3, %s2554_s13), 0 }
  0x14   : > { %2521 = sst [smem:[#allocation11_spill]] %s2556_s13  ;;  %s37_s19 = ssub.s32 %s2131_s9, %s2556_s13 }
  0x15   : > { %s2520_s16 = scalar_select %p2246_p5, 1, 0 }
  0x16   : > { %s2254_s18 = scalar_select %p66_p4, %s2107_s26, %s68_s17  }
  0x17   : > { %p75_p6 = scmp.ne.s32.totalorder %s2107_s26, %s2103_s25  ;;  %s39_s20 = sor.u32 %s38_s15, %s37_s19 }
  0x18   : > { %2522 = sst [smem:[#allocation12_spill]] %s2254_s18  ;;  %p81_p7 = scmp.ne.s32.totalorder %s2103_s25, %s2099_s24 }
  0x19   : > { %p40_p8 = scmp.eq.s32.totalorder %s39_s20, 0  ;;  %p2262_p9 = por %p75_p6, %p50_p2 }
  0x1a   : > { %p2266_p10 = scmp.eq.s32.totalorder %s1556_s11, 0  ;;  %p1558_p11 = scmp.ge.s32.totalorder %s2135_s10, 1 }
  0x1b   : > { %s2523_s21 = scalar_select %p2262_p9, 1, 0 }
  0x1c   : > { %s2524_s22 = scalar_select %p2266_p10, 1, 0 }
  0x1d   : > { %s2272_s23 = scalar_select %p40_p8, %s2115_s28, %s42_s14  }
  0x1e   : > { %p2276_p12 = por %p2266_p10, %p81_p7  ;;  %p223_p13 = scmp.lt.s32.totalorder %s2135_s10, 7 }
  0x1f   : > { %2525 = sst [smem:[#allocation13_spill]] %s2272_s23  ;;  %s2137_s11 = smov [#allocation6]  }
  0x20   : > { %s2526_s17 = scalar_select %p2276_p12, 1, 0 }
  0x21   : > { %p2281_p0 = pnand %p1558_p11, %p223_p13  ;;  %s238_s15 = sshll.u32 %s2137_s11, 4  ;;  %s239_s15 = int_to_ptr.vmem [resolvable:$true] %s238_s15 }
  0x22   : > { %s1993_s13 = scalar_lea.hbm %s2502_s3, 8192 }
  0x23   : > { %s2527_s24 = scalar_select %p2281_p0, 1, 0 }
  0x24   : > { %p1732_p1 = pneg %p2281_p0  ;;  %p1994_p3 = scmp.ne.s32.totalorder %s2502_s3, %s1993_s13 }
  0x25   : > { %p2000_p8 = scmp.lt.u32.totalorder %s1993_s13, %s2502_s3 }
  0x26   : > { %p2289_p2 = pnand %p1732_p1, %p2266_p10 }
  0x28   : > { %p1995_p4 = pneg %p2289_p2 }
  0x2a   : > { %p1996_p6 = pnand %p1995_p4, %p1994_p3 }
  0x2c   : > { %p1997_p7 = pneg %p1996_p6 }
  0x2e   : > { %p2002_p11 = pnand %p2000_p8, %p1997_p7 }
  0x30   : > { %2005 = shalt.err (!%p2002_p11)
}
  0x31   : > { %s2006_s6 = scalar_lea.vmem %s239_s15, 8192  ;;  %p2014_p12 = scmp.lt.s32.totalorder %s239_s15, %s239_s15 }
  0x32   : > { %p2007_p13 = scmp.ne.s32.totalorder %s239_s15, %s2006_s6  ;;  %p2015_p0 = scmp.lt.s32.totalorder %s2006_s6, %s2006_s6 }
  0x34   : > { %p2009_p1 = pnand %p2007_p13, %p1995_p4  ;;  %p2016_p9 = por %p2015_p0, %p2014_p12 }
  0x36   : > { %p2010_p10 = pneg %p2009_p1 }
  0x38   : > { %p2017_p5 = pnand %p2016_p9, %p2010_p10 }
  0x3a   : > { %2020 = shalt.err (!%p2017_p5)
}
  0x3b   : > { %s2138_s12 = smov 128   ;;  %s2139_s23 = smov 8  }
  0x3c   : > { %1735 = dma.hbm_to_vmem [thread:$0]  (!%p2289_p2), %s2502_s3, 8192, %s239_s15, [#allocation7], %s2138_s12, %s2138_s12, %s2139_s23  }
  0x3d   : > { %p1560_p3 = scmp.ge.s32.totalorder %s2135_s10, 6 }
  0x3e   : > { %p2529_p6 = scmp.ne.s32.totalorder (!%p1560_p3), %s2520_s16, 0 }
  0x3f   : > { %257 = sbr.rel (%p1560_p3) target bundleno = 105 (0x69), region = 36 }
  0x46   : > { %260 = sbr.rel (!%p2529_p6) target bundleno = 78 (0x4e), region = 40  ;;  %s262_s6 = sand.u32 (%p2529_p6), 1, %s2115_s28  }
  0x47   : > { %s1725_s13 = smul.u32 (%p2529_p6), 6, %s2131_s9  ;;  %s1561_s18 = sshll.u32 (%p2529_p6), %s262_s6, 3 }
  0x48   : > { %s264_s15 = scalar_lea.vmem (%p2529_p6), [#allocation3], %s1561_s18 }
  0x49   : > { %s267_s11 = sadd.s32 (%p2529_p6), %s2127_s8, %s1725_s13 }
  0x4a   : > { %s1564_s4 = sshll.u32 (%p2529_p6), %s267_s11, 2 }
  0x4b   : > { %s269_s2 = scalar_lea.vmem (%p2529_p6), %s2499_s0, %s1564_s4 }
  0x4c   : > { %v285_v0 = vld [vmem:[%s269_s2] sm:$0xf] (%p2529_p6)  ;;  %v287_v1 = vld [vmem:[%s269_s2 + $0xc] sm:$0xf] (%p2529_p6) }
  0x4d   : > { %286 = vst [vmem:[%s264_s15] sm:$0xf] %v285_v0  ;;  %288 = vst [vmem:[%s264_s15 + $0x4] sm:$0xf] %v287_v1 }
  0x4e PF: > { %s316_s16 = sand.u32 1, %s2107_s26   ;;  %s1694_s12 = sshll.u32 %s2127_s8, 12 }
  0x4f   : > { %s1565_s23 = sshll.u32 %s316_s16, 8  ;;  %s2323_s6 = scalar_lea.hbm %s2500_s1, %s1694_s12 }
  0x50   : > { %s320_s2 = scalar_lea.vmem [#allocation4], %s1565_s23  ;;  %s2327_s5 = scalar_lea.sflag [#allocation5], %s316_s16 }
  0x51   : > { %s328_s4 = sshll.u32 %s320_s2, 4  ;;  %s2021_s13 = scalar_lea.hbm %s2323_s6, 4096  ;;  %s2325_s4 = int_to_ptr.vmem [resolvable:$true] %s328_s4 }
  0x52   : > { %p2022_p5 = scmp.ne.s32.totalorder %s2323_s6, %s2021_s13  ;;  %p2530_p9 = scmp.ne.s32.totalorder %s2523_s21, 0 }
  0x53   : > { %s2025_s14 = scalar_lea.hbm %s2500_s1, 12288  ;;  %p2026_p0 = scmp.lt.u32.totalorder %s2323_s6, %s2500_s1 }
  0x54   : > { %p2023_p10 = pnand %p2022_p5, %p2530_p9  ;;  %p2027_p2 = scmp.lt.u32.totalorder %s2025_s14, %s2021_s13 }
  0x55   : > { %p2029_p7 = scmp.lt.u32.totalorder %s2021_s13, %s2323_s6 }
  0x56   : > { %p2024_p12 = pneg %p2023_p10  ;;  %p2028_p4 = por %p2027_p2, %p2026_p0 }
  0x58   : > { %p2030_p8 = por %p2029_p7, %p2028_p4 }
  0x5a   : > { %p2031_p11 = pnand %p2030_p8, %p2024_p12 }
  0x5c   : > { %2034 = shalt.err (!%p2031_p11)
}
  0x5d   : > { %s2035_s16 = scalar_lea.vmem %s2325_s4, 4096  ;;  %s2140_s23 = smov [#allocation4]  }
  0x5e   : > { %p2036_p13 = scmp.ne.s32.totalorder %s2325_s4, %s2035_s16  ;;  %s2039_s19 = sshll.u32 %s2140_s23, 4  ;;  %s2040_s19 = int_to_ptr.vmem [resolvable:$false] %s2039_s19 }
  0x5f   : > { %s2041_s20 = scalar_lea.vmem %s2040_s19, 8192  ;;  %p2042_p6 = scmp.lt.s32.totalorder %s2325_s4, %s2040_s19 }
  0x60   : > { %p2037_p1 = pnand %p2036_p13, %p2530_p9  ;;  %p2043_p5 = scmp.lt.s32.totalorder %s2041_s20, %s2035_s16 }
  0x62   : > { %p2038_p3 = pneg %p2037_p1  ;;  %p2044_p10 = por %p2043_p5, %p2042_p6 }
  0x64   : > { %p2045_p0 = pnand %p2044_p10, %p2038_p3 }
  0x66   : > { %2048 = shalt.err (!%p2045_p0)
}
  0x67   : > { %s2141_s2 = smov 256   ;;  %s2142_s13 = smov 16  }
  0x68   : > { %1728 = dma.hbm_to_vmem [thread:$0]  (%p2530_p9), %s2323_s6, 4096, %s2325_s4, %s2327_s5, %s2141_s2, %s2141_s2, %s2142_s13  }
  0x69 PF: > { %p2531_p12 = scmp.ne.s32.totalorder %s2527_s24, 0 }
  0x6a   : > { %s343_s18 = sand.u32 (!%p2531_p12), 1, %s2111_s27   ;;  %s349_s11 = sand.u32 (!%p2531_p12), 1, %s2103_s25  }
  0x6b   : > { %340 = sbr.rel (%p2531_p12) target bundleno = 875 (0x36b), region = 85  ;;  %s2355_s14 = sshll.u32 (!%p2531_p12), %s343_s18, 3 }
  0x6c   : > { %s1571_s15 = sshll.u32 (!%p2531_p12), %s349_s11, 8  ;;  %s345_s12 = scalar_lea.vmem (!%p2531_p12), [#allocation3], %s2355_s14 }
  0x6d   : > { %s350_s16 = scalar_lea.sflag (!%p2531_p12), [#allocation5], %s349_s11  ;;  %s2358_s23 = scalar_lea.vmem (!%p2531_p12), [#allocation4], %s1571_s15 }
  0x6e   : > { %p2532_p2 = scmp.ne.s32.totalorder (!%p2531_p12), %s2526_s17, 0 }
  0x72   : > { %2090 = dma.done.wait (%p2532_p2), %s350_s16, 4096  }
  0x73   : > { %2092 = vsyncadd (%p2532_p2), %s350_s16, 4294963200  ;;  %p2533_p9 = scmp.ne.s32.totalorder %s2524_s22, 0 }
  0x75   : > { %2094 = dma.done.wait (%p2533_p9), [#allocation7], 8192  }
  0x76   : > { %2096 = vsyncadd (%p2533_p9), [#allocation7], 4294959104  ;;  %s1573_s27 = sshll.u32 %s2123_s30, 1  ;;  %p1575_p7 = scmp.ne.s32.totalorder %s2119_s29, 0 }
  0x77   : > { %p395_p4 = scmp.lt.s32.totalorder %s1573_s27, 3  ;;  %v407_v2 = vlaneseq (!%p1575_p7)  ;;  %s2534_s19 = sld [smem:[#allocation14_spill]] (!%p1575_p7) }
  0x78   : > { %404 = sbr.rel (%p1575_p7) target bundleno = 132 (0x84), region = 101 }
  0x79   : > { %s2558_s27 = smov (!%p395_p4, %s1573_s27), 3  ;;  %v408_v3 = vshrl.u32 (!%p1575_p7), %v407_v2, 7 }
  0x7a   : > { %s1574_s21 = sshll.u32 %s2558_s27, 3 }
  0x7b   : > { %s2372_s4 = scalar_lea.vmem %s2506_s7, %s1574_s21  ;;  %v409_v5 = vsub.s32 (!%p1575_p7), 0, %v408_v3  ;;  %v413_v6 = vsub.s32 (!%p1575_p7), 1, %v408_v3  ;;  %v417_v7 = vsub.s32 (!%p1575_p7), 2, %v408_v3  ;;  %v421_v8 = vsub.s32 (!%p1575_p7), 3, %v408_v3 }
  0x7d   : > { %v405_v4 = vld [vmem:[%s2534_s19] sm:$0xf] (!%p1575_p7) }
  0x7e   : > { %v410_v9 = vrot.slane (!%p1575_p7), %v405_v4, %v409_v5  ;;  %v414_v10 = vrot.slane (!%p1575_p7), %v405_v4, %v413_v6  ;;  %v418_v11 = vrot.slane (!%p1575_p7), %v405_v4, %v417_v7  ;;  %v422_v12 = vrot.slane (!%p1575_p7), %v405_v4, %v421_v8 }
  0x80   : > { %427 = vst [vmem:[#allocation2] sm:$0xff] %v410_v9  ;;  %431 = vst [vmem:[#allocation2 + $0x20] sm:$0xff] %v410_v9 }
  0x81   : > { %428 = vst [vmem:[#allocation2 + $0x8] sm:$0xff] %v414_v10  ;;  %432 = vst [vmem:[#allocation2 + $0x28] sm:$0xff] %v414_v10 }
  0x82   : > { %429 = vst [vmem:[#allocation2 + $0x10] sm:$0xff] %v418_v11  ;;  %433 = vst [vmem:[#allocation2 + $0x30] sm:$0xff] %v418_v11 }
  0x83   : > { %430 = vst [vmem:[#allocation2 + $0x18] sm:$0xff] %v422_v12  ;;  %434 = vst [vmem:[#allocation2 + $0x38] sm:$0xff] %v422_v12 }
  0x84 PF: > { %v1824_v13 = vld [vmem:[%s2358_s23 + $0x4] ss:$16 sps:$4 sm:$0xff]   ;;  %v1826_v14 = vld [vmem:[%s2358_s23 + $0xc] ss:$16 sps:$4 sm:$0xff]   ;;  %v2143_v15 = vmov 0   ;;  %p1609_p8 = scmp.ne.s32.totalorder %s2119_s29, 2 }
  0x85   : > { %675 = vmatprep.mubr.bf16.mxu0 %v2143_v15  ;;  %718 = vmatprep.mubr.bf16.mxu1 %v2143_v15  ;;  %v1828_v16 = vld [vmem:[%s2358_s23] ss:$16 sps:$4 sm:$0xff]   ;;  %v1829_v17 = vld [vmem:[%s2358_s23 + $0x8] ss:$16 sps:$4 sm:$0xff]   ;;  %v1830_v18 = vld [vmem:[%s2358_s23 + $0x24] ss:$16 sps:$4 sm:$0xff]  }
  0x86   : > { %643 = vmatprep.subr.bf16.mxu0 %v1824_v13  ;;  %686 = vmatprep.subr.bf16.mxu1 %v1826_v14  ;;  %v1832_v19 = vld [vmem:[%s2358_s23 + $0x2c] ss:$16 sps:$4 sm:$0xff]   ;;  %v1834_v20 = vld [vmem:[%s2358_s23 + $0x20] ss:$16 sps:$4 sm:$0xff]   ;;  %v1835_v21 = vld [vmem:[%s2358_s23 + $0x28] ss:$16 sps:$4 sm:$0xff]  }
  0x87   : > { %644 = vmatpush1.bf16.msra.mxu0 %v1828_v16  ;;  %687 = vmatpush1.bf16.msra.mxu1 %v1829_v17  ;;  %v1836_v22 = vld [vmem:[%s2358_s23 + $0x44] ss:$16 sps:$4 sm:$0xff]   ;;  %v1838_v23 = vld [vmem:[%s2358_s23 + $0x4c] ss:$16 sps:$4 sm:$0xff]   ;;  %v1840_v24 = vld [vmem:[%s2358_s23 + $0x40] ss:$16 sps:$4 sm:$0xff]  }
  0x88   : > { %645 = vmatprep.subr.bf16.mxu0 %v1830_v18  ;;  %688 = vmatprep.subr.bf16.mxu1 %v1832_v19  ;;  %v1841_v25 = vld [vmem:[%s2358_s23 + $0x48] ss:$16 sps:$4 sm:$0xff]   ;;  %v1842_v26 = vld [vmem:[%s2358_s23 + $0x64] ss:$16 sps:$4 sm:$0xff]   ;;  %v1844_v27 = vld [vmem:[%s2358_s23 + $0x6c] ss:$16 sps:$4 sm:$0xff]  }
  0x89   : > { %v1846_v28 = vld [vmem:[%s2358_s23 + $0x60] ss:$16 sps:$4 sm:$0xff]   ;;  %v1847_v29 = vld [vmem:[%s2358_s23 + $0x68] ss:$16 sps:$4 sm:$0xff]   ;;  %v1848_v30 = vld [vmem:[%s2358_s23 + $0x84] ss:$16 sps:$4 sm:$0xff]  }
  0x8a   : > { %v1850_v31 = vld [vmem:[%s2358_s23 + $0x8c] ss:$16 sps:$4 sm:$0xff]   ;;  %v1852_v32 = vld [vmem:[%s2358_s23 + $0x80] ss:$16 sps:$4 sm:$0xff]   ;;  %v1853_v33 = vld [vmem:[%s2358_s23 + $0x88] ss:$16 sps:$4 sm:$0xff]  }
  0x8b   : > { %646 = vmatpush1.bf16.msra.mxu0 %v1834_v20  ;;  %689 = vmatpush1.bf16.msra.mxu1 %v1835_v21  ;;  %v1854_v34 = vld [vmem:[%s2358_s23 + $0xa4] ss:$16 sps:$4 sm:$0xff]   ;;  %v1856_v35 = vld [vmem:[%s2358_s23 + $0xac] ss:$16 sps:$4 sm:$0xff]   ;;  %v1858_v36 = vld [vmem:[%s2358_s23 + $0xa0] ss:$16 sps:$4 sm:$0xff]  }
  0x8c   : > { %647 = vmatprep.subr.bf16.mxu0 %v1836_v22  ;;  %690 = vmatprep.subr.bf16.mxu1 %v1838_v23  ;;  %v1859_v37 = vld [vmem:[%s2358_s23 + $0xa8] ss:$16 sps:$4 sm:$0xff]   ;;  %v1860_v38 = vld [vmem:[%s2358_s23 + $0xc4] ss:$16 sps:$4 sm:$0xff]   ;;  %v1862_v39 = vld [vmem:[%s2358_s23 + $0xcc] ss:$16 sps:$4 sm:$0xff]  }
  0x8d   : > { %v1864_v40 = vld [vmem:[%s2358_s23 + $0xc0] ss:$16 sps:$4 sm:$0xff]   ;;  %v1865_v41 = vld [vmem:[%s2358_s23 + $0xc8] ss:$16 sps:$4 sm:$0xff]   ;;  %v1866_v42 = vld [vmem:[%s2358_s23 + $0xe4] ss:$16 sps:$4 sm:$0xff]  }
  0x8e   : > { %v1868_v43 = vld [vmem:[%s2358_s23 + $0xec] ss:$16 sps:$4 sm:$0xff]   ;;  %v1870_v44 = vld [vmem:[%s2358_s23 + $0xe0] ss:$16 sps:$4 sm:$0xff]   ;;  %v1871_v45 = vld [vmem:[%s2358_s23 + $0xe8] ss:$16 sps:$4 sm:$0xff]  }
  0x8f   : > { %648 = vmatpush1.bf16.msra.mxu0 %v1840_v24  ;;  %691 = vmatpush1.bf16.msra.mxu1 %v1841_v25  ;;  %v1872_v46 = vld [vmem:[%s345_s12] sm:$0xff]   ;;  %v437_v48 = vld [vmem:[#allocation2 + $0x10] sm:$0xff]  ;;  %v438_v50 = vld [vmem:[#allocation2 + $0x18] sm:$0xff]  ;;  %s2535_s22 = sld [smem:[#allocation16_spill]] (!%p1609_p8)  ;;  %s2536_s6 = sld [smem:[#allocation15_spill]] (!%p1609_p8) }
  0x90   : > { %649 = vmatprep.subr.bf16.mxu0 %v1842_v26  ;;  %692 = vmatprep.subr.bf16.mxu1 %v1844_v27  ;;  %v435_v47 = vld [vmem:[#allocation2] sm:$0xff]  ;;  %v436_v49 = vld [vmem:[#allocation2 + $0x8] sm:$0xff]  ;;  %v441_v54 = vld [vmem:[#allocation2 + $0x30] sm:$0xff]  ;;  %s2537_s19 = sld [smem:[#allocation17_spill]] (!%p1609_p8) }
  0x91   : > { %v439_v53 = vld [vmem:[#allocation2 + $0x20] sm:$0xff]  ;;  %v440_v59 = vld [vmem:[#allocation2 + $0x28] sm:$0xff]  ;;  %v442_v60 = vld [vmem:[#allocation2 + $0x38] sm:$0xff] }
  0x92   : > { %v1873_v7 = vld [vmem:[#allocation6 + $0x4] ss:$8 sps:$4 sm:$0xff] (!%p1609_p8)   ;;  %v1877_v9 = vld [vmem:[#allocation6] ss:$8 sps:$4 sm:$0xff] (!%p1609_p8)   ;;  %v1879_v11 = vld [vmem:[#allocation6 + $0x14] ss:$8 sps:$4 sm:$0xff] (!%p1609_p8)  }
  0x93   : > { %650 = vmatpush1.bf16.msra.mxu0 %v1846_v28  ;;  %693 = vmatpush1.bf16.msra.mxu1 %v1847_v29  ;;  %v1875_v8 = vld [vmem:[#allocation6 + $0x104] ss:$8 sps:$4 sm:$0xff] (!%p1609_p8)   ;;  %v1878_v10 = vld [vmem:[#allocation6 + $0x100] ss:$8 sps:$4 sm:$0xff] (!%p1609_p8)   ;;  %v1881_v12 = vld [vmem:[#allocation6 + $0x114] ss:$8 sps:$4 sm:$0xff] (!%p1609_p8)  }
  0x94   : > { %651 = vmatprep.subr.bf16.mxu0 %v1848_v30  ;;  %694 = vmatprep.subr.bf16.mxu1 %v1850_v31  ;;  %v1883_v13 = vld [vmem:[#allocation6 + $0x10] ss:$8 sps:$4 sm:$0xff] (!%p1609_p8)   ;;  %v1885_v15 = vld [vmem:[#allocation6 + $0x24] ss:$8 sps:$4 sm:$0xff] (!%p1609_p8)   ;;  %v1889_v17 = vld [vmem:[#allocation6 + $0x20] ss:$8 sps:$4 sm:$0xff] (!%p1609_p8)  }
  0x95   : > { %v1884_v14 = vld [vmem:[#allocation6 + $0x110] ss:$8 sps:$4 sm:$0xff] (!%p1609_p8)   ;;  %v1887_v16 = vld [vmem:[#allocation6 + $0x124] ss:$8 sps:$4 sm:$0xff] (!%p1609_p8)   ;;  %v1890_v18 = vld [vmem:[#allocation6 + $0x120] ss:$8 sps:$4 sm:$0xff] (!%p1609_p8)  }
  0x96   : > { %v1891_v19 = vld [vmem:[#allocation6 + $0x34] ss:$8 sps:$4 sm:$0xff] (!%p1609_p8)   ;;  %v1895_v21 = vld [vmem:[#allocation6 + $0x30] ss:$8 sps:$4 sm:$0xff] (!%p1609_p8)   ;;  %v1897_v23 = vld [vmem:[#allocation6 + $0x44] ss:$8 sps:$4 sm:$0xff] (!%p1609_p8)  }
  0x97   : > { %652 = vmatpush1.bf16.msra.mxu0 %v1852_v32  ;;  %695 = vmatpush1.bf16.msra.mxu1 %v1853_v33  ;;  %v1893_v20 = vld [vmem:[#allocation6 + $0x134] ss:$8 sps:$4 sm:$0xff] (!%p1609_p8)   ;;  %v1896_v22 = vld [vmem:[#allocation6 + $0x130] ss:$8 sps:$4 sm:$0xff] (!%p1609_p8)   ;;  %v1899_v24 = vld [vmem:[#allocation6 + $0x144] ss:$8 sps:$4 sm:$0xff] (!%p1609_p8)  }
  0x98   : > { %653 = vmatprep.subr.bf16.mxu0 %v1854_v34  ;;  %696 = vmatprep.subr.bf16.mxu1 %v1856_v35  ;;  %v1901_v25 = vld [vmem:[#allocation6 + $0x40] ss:$8 sps:$4 sm:$0xff] (!%p1609_p8)   ;;  %v1903_v27 = vld [vmem:[#allocation6 + $0x54] ss:$8 sps:$4 sm:$0xff] (!%p1609_p8)   ;;  %v1907_v29 = vld [vmem:[#allocation6 + $0x50] ss:$8 sps:$4 sm:$0xff] (!%p1609_p8)  }
  0x99   : > { %v1902_v26 = vld [vmem:[#allocation6 + $0x140] ss:$8 sps:$4 sm:$0xff] (!%p1609_p8)   ;;  %v1905_v28 = vld [vmem:[#allocation6 + $0x154] ss:$8 sps:$4 sm:$0xff] (!%p1609_p8)   ;;  %v1908_v30 = vld [vmem:[#allocation6 + $0x150] ss:$8 sps:$4 sm:$0xff] (!%p1609_p8)  }
  0x9a   : > { %v1909_v31 = vld [vmem:[#allocation6 + $0x64] ss:$8 sps:$4 sm:$0xff] (!%p1609_p8)   ;;  %v1913_v33 = vld [vmem:[#allocation6 + $0x60] ss:$8 sps:$4 sm:$0xff] (!%p1609_p8)   ;;  %v1915_v35 = vld [vmem:[#allocation6 + $0x74] ss:$8 sps:$4 sm:$0xff] (!%p1609_p8)  }
  0x9b   : > { %654 = vmatpush1.bf16.msra.mxu0 %v1858_v36  ;;  %697 = vmatpush1.bf16.msra.mxu1 %v1859_v37  ;;  %v1911_v32 = vld [vmem:[#allocation6 + $0x164] ss:$8 sps:$4 sm:$0xff] (!%p1609_p8)   ;;  %v1914_v34 = vld [vmem:[#allocation6 + $0x160] ss:$8 sps:$4 sm:$0xff] (!%p1609_p8)   ;;  %v1917_v36 = vld [vmem:[#allocation6 + $0x174] ss:$8 sps:$4 sm:$0xff] (!%p1609_p8)  }
  0x9c   : > { %655 = vmatprep.subr.bf16.mxu0 %v1860_v38  ;;  %698 = vmatprep.subr.bf16.mxu1 %v1862_v39  ;;  %v1919_v37 = vld [vmem:[#allocation6 + $0x70] ss:$8 sps:$4 sm:$0xff] (!%p1609_p8)   ;;  %v1921_v39 = vld [vmem:[#allocation6 + $0x84] ss:$8 sps:$4 sm:$0xff] (!%p1609_p8)  }
  0x9d   : > { %v1920_v38 = vld [vmem:[#allocation6 + $0x170] ss:$8 sps:$4 sm:$0xff] (!%p1609_p8)  }
  0x9f   : > { %656 = vmatpush1.bf16.msra.mxu0 %v1864_v40  ;;  %699 = vmatpush1.bf16.msra.mxu1 %v1865_v41  ;;  %v1923_v40 = vld [vmem:[#allocation6 + $0x184] ss:$8 sps:$4 sm:$0xff] (!%p1609_p8)   ;;  %v1925_v41 = vld [vmem:[#allocation6 + $0x80] ss:$8 sps:$4 sm:$0xff] (!%p1609_p8)  }
  0xa0   : > { %657 = vmatprep.subr.bf16.mxu0 %v1866_v42  ;;  %700 = vmatprep.subr.bf16.mxu1 %v1868_v43  ;;  %v1926_v42 = vld [vmem:[#allocation6 + $0x180] ss:$8 sps:$4 sm:$0xff] (!%p1609_p8)   ;;  %v1927_v43 = vld [vmem:[#allocation6 + $0x94] ss:$8 sps:$4 sm:$0xff] (!%p1609_p8)  }
  0xa3   : > { %658 = vmatpush1.bf16.msra.mxu0 %v1870_v44  ;;  %701 = vmatpush1.bf16.msra.mxu1 %v1871_v45  ;;  %v1929_v44 = vld [vmem:[#allocation6 + $0x194] ss:$8 sps:$4 sm:$0xff] (!%p1609_p8)   ;;  %v1931_v45 = vld [vmem:[#allocation6 + $0x90] ss:$8 sps:$4 sm:$0xff] (!%p1609_p8)  }
  0xa4   : > { %1165 = vmatprep.subr.bf16.mxu1 (!%p1609_p8), %v1873_v7  ;;  %1208 = vmatprep.subr.bf16.mxu0 (!%p1609_p8), %v1875_v8  ;;  %v1955_v7 = vld [vmem:[#allocation6 + $0xd0] ss:$8 sps:$4 sm:$0xff] (!%p1609_p8)  }
  0xa5   : > { %v1956_v8 = vld [vmem:[#allocation6 + $0x1d0] ss:$8 sps:$4 sm:$0xff] (!%p1609_p8)  }
  0xa6   : > { %676 = vmatmul.mubr.bf16.vlgmr.msra.gmra.mrb[0].mxu0 %v1872_v46  ;;  %719 = vmatmul.mubr.bf16.vlgmr.msra.gmra.mrb[0].mxu1 %v1872_v46  ;;  %v1932_v46 = vld [vmem:[#allocation6 + $0x190] ss:$8 sps:$4 sm:$0xff] (!%p1609_p8)  }
  0xa7   : > { %1166 = vmatpush1.bf16.msra.mxu1 (!%p1609_p8), %v1877_v9  ;;  %1209 = vmatpush1.bf16.msra.mxu0 (!%p1609_p8), %v1878_v10 }
  0xa8   : > { %1167 = vmatprep.subr.bf16.mxu1 (!%p1609_p8), %v1879_v11  ;;  %1210 = vmatprep.subr.bf16.mxu0 (!%p1609_p8), %v1881_v12  ;;  %v1957_v11 = vld [vmem:[#allocation6 + $0xe4] ss:$8 sps:$4 sm:$0xff] (!%p1609_p8)  }
  0xab   : > { %1168 = vmatpush1.bf16.msra.mxu1 (!%p1609_p8), %v1883_v13  ;;  %1211 = vmatpush1.bf16.msra.mxu0 (!%p1609_p8), %v1884_v14  ;;  %v1959_v14 = vld [vmem:[#allocation6 + $0x1e4] ss:$8 sps:$4 sm:$0xff] (!%p1609_p8)  }
  0xac   : > { %1169 = vmatprep.subr.bf16.mxu1 (!%p1609_p8), %v1885_v15  ;;  %1212 = vmatprep.subr.bf16.mxu0 (!%p1609_p8), %v1887_v16  ;;  %v1961_v15 = vld [vmem:[#allocation6 + $0xe0] ss:$8 sps:$4 sm:$0xff] (!%p1609_p8)  }
  0xad   : > { %v1962_v16 = vld [vmem:[#allocation6 + $0x1e0] ss:$8 sps:$4 sm:$0xff] (!%p1609_p8)  }
  0xaf   : > { %1170 = vmatpush1.bf16.msra.mxu1 (!%p1609_p8), %v1889_v17  ;;  %1213 = vmatpush1.bf16.msra.mxu0 (!%p1609_p8), %v1890_v18  ;;  %v1963_v17 = vld [vmem:[#allocation6 + $0xf4] ss:$8 sps:$4 sm:$0xff] (!%p1609_p8)  }
  0xb0   : > { %1171 = vmatprep.subr.bf16.mxu1 (!%p1609_p8), %v1891_v19  ;;  %1214 = vmatprep.subr.bf16.mxu0 (!%p1609_p8), %v1893_v20  ;;  %v1965_v18 = vld [vmem:[#allocation6 + $0x1f4] ss:$8 sps:$4 sm:$0xff] (!%p1609_p8)  }
  0xb3   : > { %1172 = vmatpush1.bf16.msra.mxu1 (!%p1609_p8), %v1895_v21  ;;  %1215 = vmatpush1.bf16.msra.mxu0 (!%p1609_p8), %v1896_v22 }
  0xb4   : > { %1173 = vmatprep.subr.bf16.mxu1 (!%p1609_p8), %v1897_v23  ;;  %1216 = vmatprep.subr.bf16.mxu0 (!%p1609_p8), %v1899_v24  ;;  %v1967_v23 = vld [vmem:[#allocation6 + $0xf0] ss:$8 sps:$4 sm:$0xff] (!%p1609_p8)  }
  0xb5   : > { %v1968_v24 = vld [vmem:[#allocation6 + $0x1f0] ss:$8 sps:$4 sm:$0xff] (!%p1609_p8)  }
  0xb7   : > { %1174 = vmatpush1.bf16.msra.mxu1 (!%p1609_p8), %v1901_v25  ;;  %1217 = vmatpush1.bf16.msra.mxu0 (!%p1609_p8), %v1902_v26  ;;  %v1969_v25 = vld [vmem:[%s2535_s22 + $0x40] sm:$0xff] (!%p1609_p8)  }
  0xb8   : > { %1175 = vmatprep.subr.bf16.mxu1 (!%p1609_p8), %v1903_v27  ;;  %1218 = vmatprep.subr.bf16.mxu0 (!%p1609_p8), %v1905_v28  ;;  %v1970_v28 = vld [vmem:[%s2535_s22] sm:$0xff] (!%p1609_p8)  }
  0xbb   : > { %1176 = vmatpush1.bf16.msra.mxu1 (!%p1609_p8), %v1907_v29  ;;  %1219 = vmatpush1.bf16.msra.mxu0 (!%p1609_p8), %v1908_v30  ;;  %v1971_v29 = vld [vmem:[%s2535_s22 + $0x48] sm:$0xff] (!%p1609_p8)  }
  0xbc   : > { %1177 = vmatprep.subr.bf16.mxu1 (!%p1609_p8), %v1909_v31  ;;  %1220 = vmatprep.subr.bf16.mxu0 (!%p1609_p8), %v1911_v32  ;;  %v1972_v30 = vld [vmem:[%s2535_s22 + $0x8] sm:$0xff] (!%p1609_p8)   ;;  %v1973_v31 = vld [vmem:[%s2535_s22 + $0x50] sm:$0xff] (!%p1609_p8)  }
  0xbd   : > { %v1974_v32 = vld [vmem:[%s2535_s22 + $0x10] sm:$0xff] (!%p1609_p8)  }
  0xbf   : > { %1178 = vmatpush1.bf16.msra.mxu1 (!%p1609_p8), %v1913_v33  ;;  %1221 = vmatpush1.bf16.msra.mxu0 (!%p1609_p8), %v1914_v34  ;;  %v1975_v33 = vld [vmem:[%s2535_s22 + $0x58] sm:$0xff] (!%p1609_p8)  }
  0xc0   : > { %1179 = vmatprep.subr.bf16.mxu1 (!%p1609_p8), %v1915_v35  ;;  %1222 = vmatprep.subr.bf16.mxu0 (!%p1609_p8), %v1917_v36  ;;  %v1976_v34 = vld [vmem:[%s2535_s22 + $0x18] sm:$0xff] (!%p1609_p8)   ;;  %v1977_v35 = vld [vmem:[%s2535_s22 + $0x60] sm:$0xff] (!%p1609_p8)  }
  0xc1   : > { %v1978_v36 = vld [vmem:[%s2535_s22 + $0x20] sm:$0xff] (!%p1609_p8)  }
  0xc3   : > { %1180 = vmatpush1.bf16.msra.mxu1 (!%p1609_p8), %v1919_v37  ;;  %1223 = vmatpush1.bf16.msra.mxu0 (!%p1609_p8), %v1920_v38  ;;  %v1979_v37 = vld [vmem:[%s2535_s22 + $0x68] sm:$0xff] (!%p1609_p8)  }
  0xc4   : > { %1181 = vmatprep.subr.bf16.mxu1 (!%p1609_p8), %v1921_v39  ;;  %1224 = vmatprep.subr.bf16.mxu0 (!%p1609_p8), %v1923_v40  ;;  %v1980_v38 = vld [vmem:[%s2535_s22 + $0x28] sm:$0xff] (!%p1609_p8)   ;;  %v1981_v39 = vld [vmem:[%s2535_s22 + $0x70] sm:$0xff] (!%p1609_p8)  }
  0xc5   : > { %v1982_v40 = vld [vmem:[%s2535_s22 + $0x30] sm:$0xff] (!%p1609_p8)  }
  0xc7   : > { %1182 = vmatpush1.bf16.msra.mxu1 (!%p1609_p8), %v1925_v41  ;;  %1225 = vmatpush1.bf16.msra.mxu0 (!%p1609_p8), %v1926_v42  ;;  %v1983_v41 = vld [vmem:[%s2535_s22 + $0x78] sm:$0xff] (!%p1609_p8)  }
  0xc8   : > { %1183 = vmatprep.subr.bf16.mxu1 (!%p1609_p8), %v1927_v43  ;;  %1226 = vmatprep.subr.bf16.mxu0 (!%p1609_p8), %v1929_v44  ;;  %v1984_v42 = vld [vmem:[%s2535_s22 + $0x38] sm:$0xff] (!%p1609_p8)   ;;  %v835_v43 = vlaneseq (!%p1609_p8) }
  0xca   : > { %v836_v44 = vshrl.u32 (!%p1609_p8), %v835_v43, 7 }
  0xcb   : > { %1184 = vmatpush1.bf16.msra.mxu1 (!%p1609_p8), %v1931_v45  ;;  %1227 = vmatpush1.bf16.msra.mxu0 (!%p1609_p8), %v1932_v46  ;;  %v833_v46 = vld [vmem:[%s2536_s6] sm:$0x3] (!%p1609_p8) }
  0xcc   : > { %v837_v45 = vsub.s32 (!%p1609_p8), 0, %v836_v44 }
 0x179   : > { %v677_v51 = vpop.f32.mrb[0].mxu0  ;;  %v720_v52 = vpop.f32.mrb[0].mxu1  ;;  %748 = sbr.rel (%p1609_p8) target bundleno = 875 (0x36b), region = 105 }
 0x17a   : > { %v729_v55 = vadd.f32 %v677_v51, %v435_v47  ;;  %v731_v56 = vadd.f32 %v720_v52, %v437_v48  ;;  %v679_v57 = vpop.f32.mrb[1].mxu0  ;;  %v722_v58 = vpop.f32.mrb[1].mxu1  ;;  %v1933_v47 = vld [vmem:[#allocation6 + $0xa4] ss:$8 sps:$4 sm:$0xff] (!%p1609_p8)   ;;  %v1939_v51 = vld [vmem:[#allocation6 + $0xb4] ss:$8 sps:$4 sm:$0xff] (!%p1609_p8)  }
 0x17b   : > { %v730_v61 = vadd.f32 %v679_v57, %v436_v49  ;;  %v732_v62 = vadd.f32 %v722_v58, %v438_v50  ;;  %v681_v63 = vpop.f32.mrb[2].mxu0  ;;  %v724_v0 = vpop.f32.mrb[2].mxu1  ;;  %v1935_v48 = vld [vmem:[#allocation6 + $0x1a4] ss:$8 sps:$4 sm:$0xff] (!%p1609_p8)   ;;  %v1937_v49 = vld [vmem:[#allocation6 + $0xa0] ss:$8 sps:$4 sm:$0xff] (!%p1609_p8)   ;;  %1185 = vmatprep.subr.bf16.mxu1 (!%p1609_p8), %v1933_v47 }
 0x17c   : > { %737 = vst [vmem:[#allocation2] sm:$0xff] %v729_v55  ;;  %739 = vst [vmem:[#allocation2 + $0x10] sm:$0xff] %v731_v56  ;;  %v733_v1 = vadd.f32 %v681_v63, %v439_v53  ;;  %v735_v2 = vadd.f32 %v724_v0, %v441_v54  ;;  %v683_v3 = vpop.f32.mrb[3].mxu0  ;;  %v726_v4 = vpop.f32.mrb[3].mxu1  ;;  %v1938_v50 = vld [vmem:[#allocation6 + $0x1a0] ss:$8 sps:$4 sm:$0xff] (!%p1609_p8)   ;;  %1228 = vmatprep.subr.bf16.mxu0 (!%p1609_p8), %v1935_v48  ;;  %1186 = vmatpush1.bf16.msra.mxu1 (!%p1609_p8), %v1937_v49 }
 0x17d   : > { %738 = vst [vmem:[#allocation2 + $0x8] sm:$0xff] %v730_v61  ;;  %740 = vst [vmem:[#allocation2 + $0x18] sm:$0xff] %v732_v62  ;;  %v734_v5 = vadd.f32 %v683_v3, %v440_v59  ;;  %v736_v6 = vadd.f32 %v726_v4, %v442_v60  ;;  %v1941_v52 = vld [vmem:[#allocation6 + $0x1b4] ss:$8 sps:$4 sm:$0xff] (!%p1609_p8)   ;;  %v1943_v53 = vld [vmem:[#allocation6 + $0xb0] ss:$8 sps:$4 sm:$0xff] (!%p1609_p8)   ;;  %1229 = vmatpush1.bf16.msra.mxu0 (!%p1609_p8), %v1938_v50  ;;  %1187 = vmatprep.subr.bf16.mxu1 (!%p1609_p8), %v1939_v51 }
 0x17e   : > { %741 = vst [vmem:[#allocation2 + $0x20] sm:$0xff] %v733_v1  ;;  %743 = vst [vmem:[#allocation2 + $0x30] sm:$0xff] %v735_v2  ;;  %v1944_v59 = vld [vmem:[#allocation6 + $0x1b0] ss:$8 sps:$4 sm:$0xff] (!%p1609_p8)   ;;  %1230 = vmatprep.subr.bf16.mxu0 (!%p1609_p8), %v1941_v52  ;;  %v1945_v63 = vld [vmem:[#allocation6 + $0xc4] ss:$8 sps:$4 sm:$0xff] (!%p1609_p8)   ;;  %v838_v48 = vrot.slane (!%p1609_p8), %v833_v46, %v837_v45 }
 0x17f   : > { %742 = vst [vmem:[#allocation2 + $0x28] sm:$0xff] %v734_v5  ;;  %744 = vst [vmem:[#allocation2 + $0x38] sm:$0xff] %v736_v6  ;;  %v1947_v0 = vld [vmem:[#allocation6 + $0x1c4] ss:$8 sps:$4 sm:$0xff] (!%p1609_p8)   ;;  %v1949_v1 = vld [vmem:[#allocation6 + $0xc0] ss:$8 sps:$4 sm:$0xff] (!%p1609_p8)  }
 0x180   : > { %v1950_v4 = vld [vmem:[#allocation6 + $0x1c0] ss:$8 sps:$4 sm:$0xff]   ;;  %1188 = vmatpush1.bf16.msra.mxu1 %v1943_v53  ;;  %v1951_v5 = vld [vmem:[#allocation6 + $0xd4] ss:$8 sps:$4 sm:$0xff]   ;;  %v841_v47 = vsub.s32 1, %v836_v44 }
 0x181   : > { %1231 = vmatpush1.bf16.msra.mxu0 %v1944_v59  ;;  %1189 = vmatprep.subr.bf16.mxu1 %v1945_v63  ;;  %v1953_v6 = vld [vmem:[#allocation6 + $0x1d4] ss:$8 sps:$4 sm:$0xff]  }
 0x182   : > { %1232 = vmatprep.subr.bf16.mxu0 %v1947_v0  ;;  %v842_v49 = vrot.slane %v833_v46, %v841_v47 }
 0x183   : > { %v749_v9 = vld [vmem:[#allocation2] sm:$0xff]  ;;  %v751_v12 = vld [vmem:[#allocation2 + $0x10] sm:$0xff] }
 0x184   : > { %v750_v54 = vld [vmem:[#allocation2 + $0x8] sm:$0xff]  ;;  %v752_v57 = vld [vmem:[#allocation2 + $0x18] sm:$0xff]  ;;  %1190 = vmatpush1.bf16.msra.mxu1 %v1949_v1  ;;  %v757_v19 = vmax.f32 %v749_v9, 0.0  ;;  %v759_v21 = vmax.f32 %v751_v12, 0.0  ;;  %v1674_v9 = vld [vmem:[%s2537_s19] ss:$0 sm:$0xff] }
 0x185   : > { %v758_v56 = vmax.f32 %v750_v54, 0.0  ;;  %v760_v61 = vmax.f32 %v752_v57, 0.0  ;;  %v753_v10 = vld [vmem:[#allocation2 + $0x20] sm:$0xff]  ;;  %1233 = vmatpush1.bf16.msra.mxu0 %v1950_v4  ;;  %v755_v13 = vld [vmem:[#allocation2 + $0x30] sm:$0xff]  ;;  %1191 = vmatprep.subr.bf16.mxu1 %v1951_v5 }
 0x186   : > { %v754_v55 = vld [vmem:[#allocation2 + $0x28] sm:$0xff]  ;;  %v756_v58 = vld [vmem:[#allocation2 + $0x38] sm:$0xff]  ;;  %1234 = vmatprep.subr.bf16.mxu0 %v1953_v6  ;;  %v761_v20 = vmax.f32 %v753_v10, 0.0  ;;  %v763_v22 = vmax.f32 %v755_v13, 0.0 }
 0x187   : > { %v762_v60 = vmax.f32 %v754_v55, 0.0  ;;  %v764_v62 = vmax.f32 %v756_v58, 0.0 }
 0x188   : > { %1192 = vmatpush1.bf16.msra.mxu1 %v1955_v7  ;;  %v765_v26 = vpack.c.bf16 %v761_v20, %v757_v19  ;;  %v767_v27 = vpack.c.bf16 %v763_v22, %v759_v21 }
 0x189   : > { %v766_v2 = vpack.c.bf16 %v762_v60, %v758_v56  ;;  %v768_v3 = vpack.c.bf16 %v764_v62, %v760_v61  ;;  %1235 = vmatpush1.bf16.msra.mxu0 %v1956_v8  ;;  %1193 = vmatprep.subr.bf16.mxu1 %v1957_v11 }
 0x18a   : > { %1236 = vmatprep.subr.bf16.mxu0 %v1959_v14 }
 0x18b   : > { %1197 = vmatprep.mubr.bf16.mxu1 %v766_v2  ;;  %1240 = vmatprep.mubr.bf16.mxu0 %v768_v3 }
 0x18c   : > { %1194 = vmatpush1.bf16.msra.mxu1 %v1961_v15 }
 0x18d   : > { %1237 = vmatpush1.bf16.msra.mxu0 %v1962_v16  ;;  %1195 = vmatprep.subr.bf16.mxu1 %v1963_v17 }
 0x18e   : > { %1238 = vmatprep.subr.bf16.mxu0 %v1965_v18 }
 0x190   : > { %1196 = vmatpush1.bf16.msra.mxu1 %v1967_v23 }
 0x191   : > { %1239 = vmatpush1.bf16.msra.mxu0 %v1968_v24  ;;  %1695 = vmatprep.subr.bf16.mxu1 %v1969_v25 }
 0x193   : > { %1198 = vmatmul.mubr.bf16.vlgmr.msra.gmra.mrb[0].mxu1 %v765_v26 }
 0x194   : > { %1241 = vmatmul.mubr.bf16.vlgmr.msra.gmra.mrb[0].mxu0 %v767_v27  ;;  %1696 = vmatpush3.bf16.msra.mxu1 %v1970_v28 }
 0x195   : > { %1697 = vmatprep.subr.bf16.mxu1 %v1971_v29 }
 0x198   : > { %1698 = vmatpush3.bf16.msra.mxu1 %v1972_v30 }
 0x199   : > { %1699 = vmatprep.subr.bf16.mxu1 %v1973_v31 }
 0x19c   : > { %1700 = vmatpush3.bf16.msra.mxu1 %v1974_v32 }
 0x19d   : > { %1701 = vmatprep.subr.bf16.mxu1 %v1975_v33 }
 0x1a0   : > { %1702 = vmatpush3.bf16.msra.mxu1 %v1976_v34 }
 0x1a1   : > { %1703 = vmatprep.subr.bf16.mxu1 %v1977_v35 }
 0x1a4   : > { %1704 = vmatpush3.bf16.msra.mxu1 %v1978_v36 }
 0x1a5   : > { %1705 = vmatprep.subr.bf16.mxu1 %v1979_v37 }
 0x1a8   : > { %1706 = vmatpush3.bf16.msra.mxu1 %v1980_v38 }
 0x1a9   : > { %1707 = vmatprep.subr.bf16.mxu1 %v1981_v39 }
 0x1ac   : > { %1708 = vmatpush3.bf16.msra.mxu1 %v1982_v40 }
 0x1ad   : > { %1709 = vmatprep.subr.bf16.mxu1 %v1983_v41 }
 0x1b0   : > { %1710 = vmatpush3.bf16.msra.mxu1 %v1984_v42 }
 0x266   : > { %v1199_v50 = vpop.f32.mrb[0].mxu1 }
 0x267   : > { %v1242_v51 = vpop.f32.mrb[0].mxu0  ;;  %v1200_v52 = vadd.f32 %v1199_v50, %v838_v48  ;;  %v1201_v53 = vpop.f32.mrb[1].mxu1 }
 0x268   : > { %v1244_v54 = vpop.f32.mrb[1].mxu0  ;;  %v1202_v55 = vadd.f32 %v1201_v53, %v842_v49  ;;  %v1203_v56 = vpop.f32.mrb[2].mxu1 }
 0x269   : > { %v1246_v57 = vpop.f32.mrb[2].mxu0  ;;  %v1243_v58 = vadd.f32 %v1242_v51, %v1200_v52  ;;  %v1204_v59 = vadd.f32 %v1203_v56, %v838_v48  ;;  %v1205_v60 = vpop.f32.mrb[3].mxu1 }
 0x26a   : > { %v1248_v61 = vpop.f32.mrb[3].mxu0  ;;  %v1245_v62 = vadd.f32 %v1244_v54, %v1202_v55  ;;  %v1206_v63 = vadd.f32 %v1205_v60, %v842_v49 }
 0x26b   : > { %v1247_v0 = vadd.f32 %v1246_v57, %v1204_v59  ;;  %v1251_v2 = vmax.f32 %v1243_v58, 0.0 }
 0x26c   : > { %v1249_v1 = vadd.f32 %v1248_v61, %v1206_v63  ;;  %v1252_v4 = vmax.f32 %v1245_v62, 0.0 }
 0x26d   : > { %v1253_v3 = vmax.f32 %v1247_v0, 0.0 }
 0x26e   : > { %v1254_v5 = vmax.f32 %v1249_v1, 0.0 }
 0x26f   : > { %v1255_v6 = vpack.c.bf16 %v1253_v3, %v1251_v2 }
 0x270   : > { %v1256_v7 = vpack.c.bf16 %v1254_v5, %v1252_v4 }
 0x272   : > { %1424 = vmatprep.mubr.bf16.mxu1 %v1256_v7 }
 0x273   : > { %1425 = vmatmul.mubr.bf16.vlgmr.msra.gmra.mrb[4].mxu1 %v1255_v6 }
 0x346   : > { %v1711_v8 = vpop.f32.mrb[4].mxu1 }
 0x347   : > { %v1712_v10 = vpop.f32.mrb[5].mxu1 }
 0x348   : > { %v1713_v11 = vadd.f32 %v1712_v10, %v1711_v8  ;;  %v1714_v12 = vpop.f32.mrb[6].mxu1 }
 0x349   : > { %v1715_v13 = vpop.f32.mrb[7].mxu1 }
 0x34a   : > { %v1427_v14 = vadd.f32 %v1713_v11, %v1674_v9  ;;  %v1716_v15 = vadd.f32 %v1715_v13, %v1714_v12 }
 0x34c   : > { %v1433_v16 = vsub.f32 0.0, %v1427_v14  ;;  %v1430_v17 = vadd.f32 %v1716_v15, %v1674_v9 }
 0x34e   : > { %v1435_v18 = vmul.f32 1.442695, %v1433_v16  ;;  %v1434_v19 = vsub.f32 0.0, %v1430_v17 }
 0x350   : > { %1985 = vpow2.f32 %v1435_v18  ;;  %v1437_v20 = vmul.f32 1.442695, %v1434_v19 }
 0x352   : > { %1987 = vpow2.f32 %v1437_v20 }
 0x35a   : > { %v1986_v21 = vpop.eup %1985 }
 0x35b   : > { %v1439_v22 = vadd.f32 1.0, %v1986_v21 }
 0x35c   : > { %v1988_v23 = vpop.eup %1987 }
 0x35d   : > { %1989 = vrcp.f32 %v1439_v22  ;;  %v1440_v24 = vadd.f32 1.0, %v1988_v23 }
 0x35f   : > { %1991 = vrcp.f32 %v1440_v24 }
 0x367   : > { %v1990_v25 = vpop.eup %1989 }
 0x368   : > { %1445 = vst [vmem:[%s2372_s4] sm:$0xff] %v1990_v25 }
 0x369   : > { %v1992_v26 = vpop.eup %1991 }
 0x36a   : > { %1446 = vst [vmem:[%s2372_s4 + $0x8] sm:$0xff] %v1992_v26 }
 0x36b PF: > { %s21_s10 = sadd.s32 1, %s2135_s10   ;;  %s2538_s29 = sld [smem:[#allocation12_spill]] }
 0x36c   : > { %p18_p11 = scmp.ge.s32.totalorder %s21_s10, 8   ;;  %s2539_s30 = sld [smem:[#allocation13_spill]] }
 0x36d   : > { %s2540_s20 = sld [smem:[#allocation10_spill]]  ;;  %s2541_s2 = sld [smem:[#allocation11_spill]] }
 0x36e   : > { %s2542_s24 = smov %s2103_s25  ;;  %s2543_s25 = smov %s2107_s26 }
 0x36f   : > { %s2545_s27 = smov %s2115_s28  ;;  %20 = sbr.rel (!%p18_p11) target bundleno = 12 (0xc), region = 149 }
 0x371   : > { %s2544_s26 = smov %s2538_s29  ;;  %s2547_s29 = smov %s2127_s8 }
 0x372   : > { %s2546_s28 = smov %s2539_s30  ;;  %s2548_s30 = smov %s2131_s9 }
 0x373   : > { %s2549_s8 = smov %s2540_s20  ;;  %s2550_s9 = smov %s2541_s2 }
 0x376   :  { %1469 = vsyncpa [#allocation5], 1 }
 0x377   :  { %1471 = vsyncpa [#allocation5 + $0x1], 1 }
 0x378   :  { %1472 = vsyncpa [#allocation7], 1 }

</bundles_post_ra>
